<compile_context>
chip_gen: v7x
topology: tpu7x:2x2x1
jax: 0.10.0
libtpu: 0.0.40
codegen_flags: <defaults>
</compile_context>

<pallas_src>
import functools

import jax
import jax.numpy as jnp
from jax.experimental import pallas as pl
from jax.experimental.pallas import tpu as pltpu


def _round_up(a: int, m: int) -> int:
    return ((a + m - 1) // m) * m


def _pick_tile(n_rows: int, target: int) -> int:
    """Largest multiple of 8 that divides n_rows and is <= target."""
    t = min(target, n_rows)
    t = max(8, (t // 8) * 8)
    while n_rows % t != 0:   # n_rows is a multiple of 8 -> terminates at 8
        t -= 8
    return t


def _pick_parallel_tile(n_rows: int, target: int) -> int:
    """Like _pick_tile but prefers >= 2 tiles (v7x has 2 TensorCores)."""
    t = _pick_tile(n_rows, target)
    if t == n_rows and n_rows >= 16 and (n_rows // 2) % 8 == 0:
        t = n_rows // 2
    return t


# --------------------------- stage 1: prep ----------------------------------
def _prep_kernel(x_ref, y_ref, wt_ref, b_ref, xn_ref, xpn_ref, pos_ref):
    x = x_ref[...]            # (tr, Dx_p)
    y = y_ref[...]            # (tr, Dy_p)
    wt = wt_ref[...]          # (Dy_p, Dx_p)
    b = b_ref[...]            # (1, Dx_p)

    # x_pred = Linear(y) = y @ W^T + b    (MXU, f32 accumulate)
    x_pred = jnp.dot(y, wt, preferred_element_type=jnp.float32) + b

    # L2-normalize via rsqrt + multiply.  max(., tiny) keeps zero padded rows
    # at exactly 0 instead of NaN; for real rows it is numerically identical.
    xp_ss = jnp.sum(x_pred * x_pred, axis=-1, keepdims=True)
    xpn = x_pred * jax.lax.rsqrt(jnp.maximum(xp_ss, 1e-30))
    x_ss = jnp.sum(x * x, axis=-1, keepdims=True)
    xn = x * jax.lax.rsqrt(jnp.maximum(x_ss, 1e-30))

    xn_ref[...] = xn
    xpn_ref[...] = xpn
    pos_ref[...] = jnp.sum(xn * xpn, axis=-1, keepdims=True)


# --------------------------- stage 2: logsumexp ------------------------------
def _lse_kernel(xq_ref, xpk_ref, neg_ref, l_i, *, tk, n_valid, mask_last,
                resident):
    k = pl.program_id(1)
    nk = pl.num_programs(1)

    @pl.when(k == 0)
    def _():
        l_i[...] = jnp.zeros_like(l_i)

    if resident:
        # Whole normalized key matrix is VMEM-resident; slice the key tile.
        start = pl.multiple_of(k * tk, tk)
        xpk = xpk_ref[pl.ds(start, tk), :]
    else:
        xpk = xpk_ref[...]

    # NT-style contraction (contract last dim of both) - no explicit transpose.
    s = jax.lax.dot_general(
        xq_ref[...], xpk,
        dimension_numbers=(((1,), (1,)), ((), ())),
        preferred_element_type=jnp.float32)             # (tq, tk)

    # Logits are cosine similarities of unit vectors => s <= 1.  A fixed shift
    # m = 1 makes the logsumexp exact with no online max / rescale needed.
    e = jnp.exp(s - 1.0)

    if mask_last:
        # Padded key rows only live in the LAST key tile; mask is lane-wise.
        @pl.when(k == nk - 1)
        def _():
            col = k * tk + jax.lax.broadcasted_iota(jnp.int32, (1, tk), 1)
            l_i[...] += jnp.sum(jnp.where(col < n_valid, e, 0.0),
                                axis=-1, keepdims=True)

        @pl.when(k < nk - 1)
        def _():
            l_i[...] += jnp.sum(e, axis=-1, keepdims=True)
    else:
        l_i[...] += jnp.sum(e, axis=-1, keepdims=True)

    @pl.when(k == nk - 1)
    def _():
        neg_ref[...] = 1.0 + jnp.log(l_i[...])


# --------------------------- wrapper -----------------------------------------
@jax.jit
def cpc_forward(x, y, w, b):
    """NCE loss of the CPC head (matches the PyTorch module's forward)."""
    N, Dx = x.shape
    Dy = y.shape[1]
    f32 = jnp.float32

    # Lane-dense feature padding (zeros leave norms / dots unchanged).
    dx_p = _round_up(Dx, 128)
    dy_p = _round_up(Dy, 128)

    # ---- stage-2 tiling: decoupled query / key tiles -----------------------
    TQ_TGT, TK_TGT = 256, 1024
    r8 = _round_up(N, 8)
    if r8 <= TK_TGT:
        n_p = r8
        tk = n_p                       # single key tile
    else:
        n_p = _round_up(N, TK_TGT)
        tk = TK_TGT
    tq = _pick_parallel_tile(n_p, TQ_TGT)

    # ---- stage-1 tiling: its own, larger row tile (HBM-bandwidth bound) ----
    tr = _pick_parallel_tile(n_p, 512)

    x_p = jnp.zeros((n_p, dx_p), f32).at[:N, :Dx].set(x.astype(f32))
    y_p = jnp.zeros((n_p, dy_p), f32).at[:N, :Dy].set(y.astype(f32))
    wt_p = jnp.zeros((dy_p, dx_p), f32).at[:Dy, :Dx].set(w.T.astype(f32))
    b_p = jnp.zeros((1, dx_p), f32).at[0, :Dx].set(b.astype(f32))

    # ---- stage 1: linear + normalize + pos ----------------------------------
    xn, xpn, pos = pl.pallas_call(
        _prep_kernel,
        out_shape=(jax.ShapeDtypeStruct((n_p, dx_p), f32),
                   jax.ShapeDtypeStruct((n_p, dx_p), f32),
                   jax.ShapeDtypeStruct((n_p, 1), f32)),
        grid=(n_p // tr,),
        in_specs=[
            pl.BlockSpec((tr, dx_p), lambda i: (i, 0)),
            pl.BlockSpec((tr, dy_p), lambda i: (i, 0)),
            pl.BlockSpec((dy_p, dx_p), lambda i: (0, 0)),
            pl.BlockSpec((1, dx_p), lambda i: (0, 0)),
        ],
        out_specs=(
            pl.BlockSpec((tr, dx_p), lambda i: (i, 0)),
            pl.BlockSpec((tr, dx_p), lambda i: (i, 0)),
            pl.BlockSpec((tr, 1), lambda i: (i, 0)),
        ),
        compiler_params=pltpu.CompilerParams(
            dimension_semantics=("parallel",)),
    )(x_p, y_p, wt_p, b_p)

    # ---- stage 2: logsumexp over key tiles ----------------------------------
    # Make xpn VMEM-resident (read from HBM exactly once) when it fits a
    # conservative budget (v7x has only 64 MiB physical / ~32 MiB scoped VMEM;
    # account 2x for potential double buffering); otherwise stream key tiles.
    resident_bytes = n_p * dx_p * 4
    resident = (2 * resident_bytes) <= (20 * 1024 * 1024)

    if resident:
        key_spec = pl.BlockSpec((n_p, dx_p), lambda q, k: (0, 0))
        bytes_accessed = 4 * (n_p * dx_p + n_p * dx_p + n_p)
    else:
        key_spec = pl.BlockSpec((tk, dx_p), lambda q, k: (k, 0))
        bytes_accessed = 4 * (n_p * dx_p + (n_p // tq) * n_p * dx_p + n_p)

    neg = pl.pallas_call(
        functools.partial(_lse_kernel, tk=tk, n_valid=N,
                          mask_last=(n_p != N), resident=resident),
        out_shape=jax.ShapeDtypeStruct((n_p, 1), f32),
        grid=(n_p // tq, n_p // tk),
        in_specs=[
            pl.BlockSpec((tq, dx_p), lambda q, k: (q, 0)),
            key_spec,
        ],
        out_specs=pl.BlockSpec((tq, 1), lambda q, k: (q, 0)),
        scratch_shapes=[pltpu.VMEM((tq, 1), f32)],
        compiler_params=pltpu.CompilerParams(
            dimension_semantics=("parallel", "arbitrary"),
            vmem_limit_bytes=32 * 1024 * 1024),
        cost_estimate=pl.CostEstimate(
            flops=2 * n_p * n_p * dx_p,
            transcendentals=n_p * n_p,
            bytes_accessed=bytes_accessed),
    )(xn, xpn)

    # Tiny scalar epilogue over the N valid rows: relu(mean(neg - pos)).
    diff = neg[:N, 0] - pos[:N, 0]
    return jnp.maximum(jnp.mean(diff), 0.0)


def cpc_reference(x, y, w, b):
    x_pred = y @ w.T + b
    x_pred = x_pred / jnp.linalg.norm(x_pred, axis=1, keepdims=True)
    xn = x / jnp.linalg.norm(x, axis=1, keepdims=True)
    pos = jnp.sum(xn * x_pred, axis=-1)
    neg = jax.scipy.special.logsumexp(xn @ x_pred.T, axis=-1)
    return jnp.maximum(jnp.mean(neg - pos), 0.0)


if __name__ == "__main__":
    # Small shapes consistent with the module: x:(N, x_size), y:(N, y_size)
    N, x_size, y_size = 8, 32, 16

    key = jax.random.PRNGKey(0)
    kx, ky, kw, kb = jax.random.split(key, 4)

    x = jax.random.normal(kx, (N, x_size), dtype=jnp.float32)
    y = jax.random.normal(ky, (N, y_size), dtype=jnp.float32)

    # Deterministic Linear(y_size -> x_size) init (torch-style uniform bound)
    bound = 1.0 / (y_size ** 0.5)
    w = jax.random.uniform(kw, (x_size, y_size), jnp.float32, -bound, bound)
    b = jax.random.uniform(kb, (x_size,), jnp.float32, -bound, bound)

    nce = cpc_forward(x, y, w, b)
    jax.block_until_ready(nce)

    ref = cpc_reference(x, y, w, b)
    assert jnp.allclose(nce, ref, atol=1e-5, rtol=1e-5), (nce, ref)

    print("KERNEL_OK")
</pallas_src>

<mosaic_0001>
module attributes {stable_mosaic.version = 11 : i64} {
  func.func @_prep_kernel(%arg0: i32, %arg1: memref<8x128xf32, #tpu.memory_space<vmem>>, %arg2: memref<8x128xf32, #tpu.memory_space<vmem>>, %arg3: memref<128x128xf32, #tpu.memory_space<vmem>>, %arg4: memref<1x128xf32, #tpu.memory_space<vmem>>, %arg5: memref<8x128xf32, #tpu.memory_space<vmem>>, %arg6: memref<8x128xf32, #tpu.memory_space<vmem>>, %arg7: memref<8x1xf32, #tpu.memory_space<vmem>>) attributes {dimension_semantics = [#tpu.dimension_semantics<parallel>], iteration_bounds = array<i64: 1>, scalar_prefetch = 0 : i64, scratch_operands = 0 : i64, tpu.core_type = #tpu.core_type<tc>, window_params = [{transform_indices = @transform_0, window_bounds = array<i64: 8, 128>}, {transform_indices = @transform_1, window_bounds = array<i64: 8, 128>}, {pipeline_mode = #tpu.pipeline_mode<synchronous>, transform_indices = @transform_2, window_bounds = array<i64: 128, 128>}, {pipeline_mode = #tpu.pipeline_mode<synchronous>, transform_indices = @transform_3, window_bounds = array<i64: 1, 128>}, {transform_indices = @transform_4, window_bounds = array<i64: 8, 128>}, {transform_indices = @transform_5, window_bounds = array<i64: 8, 128>}, {transform_indices = @transform_6, window_bounds = array<i64: 8, 1>}]} {
    %c0 = arith.constant 0 : index
    %c0_0 = arith.constant 0 : index
    %0 = vector.load %arg1[%c0, %c0_0] : memref<8x128xf32, #tpu.memory_space<vmem>>, vector<8x128xf32>
    %c0_1 = arith.constant 0 : index
    %c0_2 = arith.constant 0 : index
    %1 = vector.load %arg2[%c0_1, %c0_2] : memref<8x128xf32, #tpu.memory_space<vmem>>, vector<8x128xf32>
    %c0_3 = arith.constant 0 : index
    %c0_4 = arith.constant 0 : index
    %2 = vector.load %arg3[%c0_3, %c0_4] : memref<128x128xf32, #tpu.memory_space<vmem>>, vector<128x128xf32>
    %c0_5 = arith.constant 0 : index
    %c0_6 = arith.constant 0 : index
    %3 = vector.load %arg4[%c0_5, %c0_6] : memref<1x128xf32, #tpu.memory_space<vmem>>, vector<1x128xf32>
    %cst = arith.constant dense<0.000000e+00> : vector<8x128xf32>
    %4 = tpu.matmul %1, %2, %cst {dimension_numbers = #tpu.dot_dimension_numbers<[1], [0], [0], [1], [0, 0, 1, 1], [], []>} : vector<8x128xf32>, vector<128x128xf32>, vector<8x128xf32> -> vector<8x128xf32>
    %5 = vector.broadcast %3 : vector<1x128xf32> to vector<8x128xf32>
    %6 = arith.addf %4, %5 : vector<8x128xf32>
    %7 = arith.mulf %6, %6 : vector<8x128xf32>
    %cst_7 = arith.constant dense<0.000000e+00> : vector<8xf32>
    %8 = vector.multi_reduction <add>, %7, %cst_7 [1] : vector<8x128xf32> to vector<8xf32>
    %9 = vector.shape_cast %8 : vector<8xf32> to vector<8x1xf32>
    %cst_8 = arith.constant 1.000000e-30 : f32
    %10 = vector.broadcast %cst_8 : f32 to vector<8x1xf32>
    %11 = arith.maximumf %9, %10 : vector<8x1xf32>
    %12 = math.rsqrt %11 : vector<8x1xf32>
    %13 = vector.broadcast %12 : vector<8x1xf32> to vector<8x128xf32>
    %14 = arith.mulf %6, %13 : vector<8x128xf32>
    %15 = arith.mulf %0, %0 : vector<8x128xf32>
    %cst_9 = arith.constant dense<0.000000e+00> : vector<8xf32>
    %16 = vector.multi_reduction <add>, %15, %cst_9 [1] : vector<8x128xf32> to vector<8xf32>
    %17 = vector.shape_cast %16 : vector<8xf32> to vector<8x1xf32>
    %cst_10 = arith.constant 1.000000e-30 : f32
    %18 = vector.broadcast %cst_10 : f32 to vector<8x1xf32>
    %19 = arith.maximumf %17, %18 : vector<8x1xf32>
    %20 = math.rsqrt %19 : vector<8x1xf32>
    %21 = vector.broadcast %20 : vector<8x1xf32> to vector<8x128xf32>
    %22 = arith.mulf %0, %21 : vector<8x128xf32>
    %c0_11 = arith.constant 0 : index
    %c0_12 = arith.constant 0 : index
    %23 = vector.load %arg5[%c0_11, %c0_12] : memref<8x128xf32, #tpu.memory_space<vmem>>, vector<8x128xf32>
    tpu.vector_store %arg5[%c0_11, %c0_12], %22 {strides = array<i32>} : memref<8x128xf32, #tpu.memory_space<vmem>>, vector<8x128xf32>,
    %c0_13 = arith.constant 0 : index
    %c0_14 = arith.constant 0 : index
    %24 = vector.load %arg6[%c0_13, %c0_14] : memref<8x128xf32, #tpu.memory_space<vmem>>, vector<8x128xf32>
    tpu.vector_store %arg6[%c0_13, %c0_14], %14 {strides = array<i32>} : memref<8x128xf32, #tpu.memory_space<vmem>>, vector<8x128xf32>,
    %25 = arith.mulf %22, %14 : vector<8x128xf32>
    %cst_15 = arith.constant dense<0.000000e+00> : vector<8xf32>
    %26 = vector.multi_reduction <add>, %25, %cst_15 [1] : vector<8x128xf32> to vector<8xf32>
    %27 = vector.shape_cast %26 : vector<8xf32> to vector<8x1xf32>
    %c0_16 = arith.constant 0 : index
    %c0_17 = arith.constant 0 : index
    %28 = vector.load %arg7[%c0_16, %c0_17] : memref<8x1xf32, #tpu.memory_space<vmem>>, vector<8x1xf32>
    tpu.vector_store %arg7[%c0_16, %c0_17], %27 {strides = array<i32>} : memref<8x1xf32, #tpu.memory_space<vmem>>, vector<8x1xf32>,
    return
  }
  func.func @transform_0(%arg0: i32) -> (i32, i32) {
    %c0_i32 = arith.constant 0 : i32
    %c0_i32_0 = arith.constant 0 : i32
    return %arg0, %c0_i32 : i32, i32
  }
  func.func @transform_1(%arg0: i32) -> (i32, i32) {
    %c0_i32 = arith.constant 0 : i32
    %c0_i32_0 = arith.constant 0 : i32
    return %arg0, %c0_i32 : i32, i32
  }
  func.func @transform_2(%arg0: i32) -> (i32, i32) {
    %c0_i32 = arith.constant 0 : i32
    %c0_i32_0 = arith.constant 0 : i32
    %c0_i32_1 = arith.constant 0 : i32
    return %c0_i32, %c0_i32_0 : i32, i32
  }
  func.func @transform_3(%arg0: i32) -> (i32, i32) {
    %c0_i32 = arith.constant 0 : i32
    %c0_i32_0 = arith.constant 0 : i32
    %c0_i32_1 = arith.constant 0 : i32
    return %c0_i32, %c0_i32_0 : i32, i32
  }
  func.func @transform_4(%arg0: i32) -> (i32, i32) {
    %c0_i32 = arith.constant 0 : i32
    %c0_i32_0 = arith.constant 0 : i32
    return %arg0, %c0_i32 : i32, i32
  }
  func.func @transform_5(%arg0: i32) -> (i32, i32) {
    %c0_i32 = arith.constant 0 : i32
    %c0_i32_0 = arith.constant 0 : i32
    return %arg0, %c0_i32 : i32, i32
  }
  func.func @transform_6(%arg0: i32) -> (i32, i32) {
    %c0_i32 = arith.constant 0 : i32
    %c0_i32_0 = arith.constant 0 : i32
    return %arg0, %c0_i32 : i32, i32
  }
}

module attributes {stable_mosaic.version = 11 : i64} {
  func.func @_lse_kernel(%arg0: i32, %arg1: i32, %arg2: memref<8x128xf32, #tpu.memory_space<vmem>>, %arg3: memref<8x128xf32, #tpu.memory_space<vmem>>, %arg4: memref<8x1xf32, #tpu.memory_space<vmem>>, %arg5: memref<8x1xf32, #tpu.memory_space<vmem>>) attributes {dimension_semantics = [#tpu.dimension_semantics<parallel>, #tpu.dimension_semantics<arbitrary>], iteration_bounds = array<i64: 1, 1>, scalar_prefetch = 0 : i64, scratch_operands = 1 : i64, tpu.core_type = #tpu.core_type<tc>, window_params = [{transform_indices = @transform_0, window_bounds = array<i64: 8, 128>}, {pipeline_mode = #tpu.pipeline_mode<synchronous>, transform_indices = @transform_1, window_bounds = array<i64: 8, 128>}, {transform_indices = @transform_2, window_bounds = array<i64: 8, 1>}]} {
    %c0_i32 = arith.constant 0 : i32
    %0 = arith.cmpi eq, %arg1, %c0_i32 : i32
    %1 = arith.extui %0 : i1 to i32
    %c0_i32_0 = arith.constant 0 : i32
    %2 = arith.cmpi ne, %1, %c0_i32_0 : i32
    scf.if %2 {
      %cst_11 = arith.constant 0.000000e+00 : f32
      %20 = vector.broadcast %cst_11 : f32 to vector<8x1xf32>
      %c0_12 = arith.constant 0 : index
      %c0_13 = arith.constant 0 : index
      %21 = vector.load %arg5[%c0_12, %c0_13] : memref<8x1xf32, #tpu.memory_space<vmem>>, vector<8x1xf32>
      tpu.vector_store %arg5[%c0_12, %c0_13], %20 {strides = array<i32>} : memref<8x1xf32, #tpu.memory_space<vmem>>, vector<8x1xf32>,
    } else {
    }
    %c8_i32 = arith.constant 8 : i32
    %3 = arith.muli %arg1, %c8_i32 : i32
    %4 = tpu.assume_multiple %3, 8 : i32
    %5 = arith.index_cast %4 : i32 to index
    %c0 = arith.constant 0 : index
    %6 = vector.load %arg3[%5, %c0] : memref<8x128xf32, #tpu.memory_space<vmem>>, vector<8x128xf32>
    %c0_1 = arith.constant 0 : index
    %c0_2 = arith.constant 0 : index
    %7 = vector.load %arg2[%c0_1, %c0_2] : memref<8x128xf32, #tpu.memory_space<vmem>>, vector<8x128xf32>
    %cst = arith.constant dense<0.000000e+00> : vector<8x8xf32>
    %8 = tpu.matmul %7, %6, %cst {dimension_numbers = #tpu.dot_dimension_numbers<[1], [1], [0], [0], [0, 0, 1, 0], [], []>} : vector<8x128xf32>, vector<8x128xf32>, vector<8x8xf32> -> vector<8x8xf32>
    %cst_3 = arith.constant 1.000000e+00 : f32
    %9 = vector.broadcast %cst_3 : f32 to vector<8x8xf32>
    %10 = arith.subf %8, %9 : vector<8x8xf32>
    %11 = math.exp %10 : vector<8x8xf32>
    %c0_4 = arith.constant 0 : index
    %c0_5 = arith.constant 0 : index
    %12 = vector.load %arg5[%c0_4, %c0_5] : memref<8x1xf32, #tpu.memory_space<vmem>>, vector<8x1xf32>
    %cst_6 = arith.constant dense<0.000000e+00> : vector<8xf32>
    %13 = vector.multi_reduction <add>, %11, %cst_6 [1] : vector<8x8xf32> to vector<8xf32>
    %14 = vector.shape_cast %13 : vector<8xf32> to vector<8x1xf32>
    %15 = arith.addf %12, %14 : vector<8x1xf32>
    %c0_7 = arith.constant 0 : index
    %c0_8 = arith.constant 0 : index
    %16 = vector.load %arg5[%c0_7, %c0_8] : memref<8x1xf32, #tpu.memory_space<vmem>>, vector<8x1xf32>
    tpu.vector_store %arg5[%c0_7, %c0_8], %15 {strides = array<i32>} : memref<8x1xf32, #tpu.memory_space<vmem>>, vector<8x1xf32>,
    %c0_i32_9 = arith.constant 0 : i32
    %17 = arith.cmpi eq, %arg1, %c0_i32_9 : i32
    %18 = arith.extui %17 : i1 to i32
    %c0_i32_10 = arith.constant 0 : i32
    %19 = arith.cmpi ne, %18, %c0_i32_10 : i32
    scf.if %19 {
      %c0_11 = arith.constant 0 : index
      %c0_12 = arith.constant 0 : index
      %20 = vector.load %arg5[%c0_11, %c0_12] : memref<8x1xf32, #tpu.memory_space<vmem>>, vector<8x1xf32>
      %21 = math.log %20 : vector<8x1xf32>
      %cst_13 = arith.constant 1.000000e+00 : f32
      %22 = vector.broadcast %cst_13 : f32 to vector<8x1xf32>
      %23 = arith.addf %22, %21 : vector<8x1xf32>
      %c0_14 = arith.constant 0 : index
      %c0_15 = arith.constant 0 : index
      %24 = vector.load %arg4[%c0_14, %c0_15] : memref<8x1xf32, #tpu.memory_space<vmem>>, vector<8x1xf32>
      tpu.vector_store %arg4[%c0_14, %c0_15], %23 {strides = array<i32>} : memref<8x1xf32, #tpu.memory_space<vmem>>, vector<8x1xf32>,
    } else {
    }
    return
  }
  func.func @transform_0(%arg0: i32, %arg1: i32) -> (i32, i32) {
    %c0_i32 = arith.constant 0 : i32
    %c0_i32_0 = arith.constant 0 : i32
    return %arg0, %c0_i32 : i32, i32
  }
  func.func @transform_1(%arg0: i32, %arg1: i32) -> (i32, i32) {
    %c0_i32 = arith.constant 0 : i32
    %c0_i32_0 = arith.constant 0 : i32
    %c0_i32_1 = arith.constant 0 : i32
    return %c0_i32, %c0_i32_0 : i32, i32
  }
  func.func @transform_2(%arg0: i32, %arg1: i32) -> (i32, i32) {
    %c0_i32 = arith.constant 0 : i32
    %c0_i32_0 = arith.constant 0 : i32
    return %arg0, %c0_i32 : i32, i32
  }
}

</mosaic_0001>

<bundles_post_ra>
// kernel: cpc_forward.2
= control target key start
LH: loop header
LB: loop body
LE: loop exit
PB: predicated region body
PF: predicated region fallthrough
CT: control target
= control target key end

     0   :  { %v230_v0 = vmov 0.0|0.0   ;;  %vm231_vm0 = vmmov 0   ;;  %v232_v4 = vmov 0.0   ;;  %vm132_vm1 = vcmask 7168   ;;  %s334_s2 = inlined_call_operand.vmem [shape: f32[128,128], index: 2, kind: input, shape index: {}]   ;;  %s335_s1 = inlined_call_operand.vmem [shape: f32[8,128], index: 1, kind: input, shape index: {}]   ;;  %s336_s3 = inlined_call_operand.vmem [shape: f32[1,128], index: 3, kind: input, shape index: {}]   ;;  %s337_s0 = inlined_call_operand.vmem [shape: f32[8,128], index: 0, kind: input, shape index: {}]   ;;  %s338_s5 = inlined_call_operand.vmem [shape: f32[8,128], index: 5, kind: output, shape index: {1}]   ;;  %s339_s4 = inlined_call_operand.vmem [shape: f32[8,128], index: 4, kind: output, shape index: {0}]   ;;  %s340_s6 = inlined_call_operand.vmem [shape: f32[8,1], index: 6, kind: output, shape index: {2}]  }
   0x1   :  { %199 = vmatprep.subr.bf16.mxu0 %v230_v0  ;;  %v22_v1 = vld [vmem:[%s334_s2] sm:$0xff]  ;;  %v23_v2 = vld [vmem:[%s334_s2 + $0x8] sm:$0xff]  ;;  %v24_v3 = vld [vmem:[%s334_s2 + $0x10] sm:$0xff]  ;;  %196 = vmatprep.mubr.msk.f32.mxu0 %vm231_vm0, %v232_v4 }
   0x2   :  { %v200_v5 = vpack.c.bf16 %v23_v2, %v22_v1  ;;  %v25_v6 = vld [vmem:[%s334_s2 + $0x18] sm:$0xff]  ;;  %v26_v8 = vld [vmem:[%s334_s2 + $0x20] sm:$0xff]  ;;  %v27_v9 = vld [vmem:[%s334_s2 + $0x28] sm:$0xff] }
   0x3   :  { %v203_v7 = vpack.c.bf16 %v25_v6, %v24_v3  ;;  %v206_v10 = vpack.c.bf16 %v27_v9, %v26_v8  ;;  %v28_v11 = vld [vmem:[%s334_s2 + $0x30] sm:$0xff]  ;;  %v29_v12 = vld [vmem:[%s334_s2 + $0x38] sm:$0xff]  ;;  %v30_v14 = vld [vmem:[%s334_s2 + $0x40] sm:$0xff] }
   0x4   :  { %201 = vmatpush3.bf16.msra.mxu0 %v200_v5  ;;  %v209_v13 = vpack.c.bf16 %v29_v12, %v28_v11  ;;  %v31_v15 = vld [vmem:[%s334_s2 + $0x48] sm:$0xff]  ;;  %v32_v17 = vld [vmem:[%s334_s2 + $0x50] sm:$0xff]  ;;  %v33_v18 = vld [vmem:[%s334_s2 + $0x58] sm:$0xff] }
   0x5   :  { %202 = vmatprep.subr.bf16.mxu0 %v230_v0  ;;  %v212_v16 = vpack.c.bf16 %v31_v15, %v30_v14  ;;  %v215_v19 = vpack.c.bf16 %v33_v18, %v32_v17  ;;  %v34_v20 = vld [vmem:[%s334_s2 + $0x60] sm:$0xff]  ;;  %v35_v21 = vld [vmem:[%s334_s2 + $0x68] sm:$0xff]  ;;  %v36_v23 = vld [vmem:[%s334_s2 + $0x70] sm:$0xff] }
   0x6   :  { %v218_v22 = vpack.c.bf16 %v35_v21, %v34_v20  ;;  %v37_v24 = vld [vmem:[%s334_s2 + $0x78] sm:$0xff]  ;;  %v21_v26 = vld [vmem:[%s335_s1] sm:$0xff] }
   0x7   :  { %v221_v25 = vpack.c.bf16 %v37_v24, %v36_v23  ;;  %v146_v27 = vld [vmem:[%s336_s3] ss:$0 sm:$0xff] }
   0x8   :  { %204 = vmatpush3.bf16.msra.mxu0 %v203_v7  ;;  %v20_v31 = vld [vmem:[%s337_s0] sm:$0xff] }
   0x9   :  { %205 = vmatprep.subr.bf16.mxu0 %v230_v0  ;;  %v121_v33 = vmul.f32 %v20_v31, %v20_v31 }
   0xc   :  { %207 = vmatpush3.bf16.msra.mxu0 %v206_v10 }
   0xd   :  { %208 = vmatprep.subr.bf16.mxu0 %v230_v0 }
  0x10   :  { %210 = vmatpush3.bf16.msra.mxu0 %v209_v13 }
  0x11   :  { %211 = vmatprep.subr.bf16.mxu0 %v230_v0 }
  0x14   :  { %213 = vmatpush3.bf16.msra.mxu0 %v212_v16 }
  0x15   :  { %214 = vmatprep.subr.bf16.mxu0 %v230_v0 }
  0x18   :  { %216 = vmatpush3.bf16.msra.mxu0 %v215_v19 }
  0x19   :  { %217 = vmatprep.subr.bf16.mxu0 %v230_v0 }
  0x1c   :  { %219 = vmatpush3.bf16.msra.mxu0 %v218_v22 }
  0x1d   :  { %220 = vmatprep.subr.bf16.mxu0 %v230_v0 }
  0x20   :  { %222 = vmatpush3.bf16.msra.mxu0 %v221_v25 }
  0x23   :  { %197 = vmatmul.mubr.f32.vlgmr.msra.gmra.mrb[0].mxu0 %v21_v26 }
  0xf6   :  { %v111_v28 = vpop.f32.mrb[0].mxu0 }
  0xf7   :  { %v112_v29 = vadd.f32 %v146_v27, %v111_v28  ;;  %v198_v30 = vpop.f32.mrb[1].mxu0 }
  0xf9   :  { %v115_v32 = vmul.f32 %v112_v29, %v112_v29 }
  0xfb   :  { %116 = vadd.xlane.f32.xlu0 %v115_v32 }
  0xff   :  { %122 = vadd.xlane.f32.xlu0 %v121_v33 }
 0x188   :  { %v117_v34 = vpop.xlane.xlu0 %116 }
 0x189   :  { %v118_v35 = vmax.f32 %v117_v34, 1e-30 }
 0x18b   :  { %226 = vrsqrt.f32 %v118_v35 }
 0x18c   :  { %v123_v36 = vpop.xlane.xlu0 %122 }
 0x18d   :  { %v124_v37 = vmax.f32 %v123_v36, 1e-30 }
 0x18f   :  { %228 = vrsqrt.f32 %v124_v37 }
 0x195   :  { %v227_v38 = vpop.eup %226 }
 0x196   :  { %v120_v39 = vmul.f32 %v227_v38, %v112_v29 }
 0x198   :  { %128 = vst [vmem:[%s338_s5] sm:$0xff] %v120_v39 }
 0x199   :  { %v229_v40 = vpop.eup %228 }
 0x19a   :  { %v126_v41 = vmul.f32 %v229_v40, %v20_v31 }
 0x19c   :  { %v129_v42 = vmul.f32 %v126_v41, %v120_v39  ;;  %127 = vst [vmem:[%s339_s4] sm:$0xff] %v126_v41 }
 0x19e   :  { %130 = vadd.xlane.f32.xlu1 %v129_v42 }
 0x22b   :  { %v131_v43 = vpop.xlane.xlu1 %130 }
 0x22c   :  { %133 = vst.msk [vmem:[%s340_s6] sm:$0xff] %vm132_vm1, %v131_v43 }

// kernel: cpc_forward.3
= control target key start
LH: loop header
LB: loop body
LE: loop exit
PB: predicated region body
PF: predicated region fallthrough
CT: control target
= control target key end

     0   :  { %vm15_vm0 = vcmask 7168   ;;  %v128_v0 = vmov 0.0   ;;  %vm129_vm1 = vmmov 0   ;;  %vm95_vm2 = vcmask 64512   ;;  %s157_s1 = inlined_call_operand.vmem [shape: f32[8,128], index: 1, kind: input, shape index: {}]   ;;  %s158_s0 = inlined_call_operand.vmem [shape: f32[8,128], index: 0, kind: input, shape index: {}]   ;;  %s159_s2 = inlined_call_operand.vmem [shape: f32[8,1], index: 2, kind: output, shape index: {}]  }
   0x1   :  { %16 = vst.msk [vmem:[#allocation2] sm:$0xff] %vm15_vm0, %v128_v0  ;;  %117 = vmatprep.subr.mxu0 %v128_v0  ;;  %v19_v1 = vld [vmem:[%s157_s1] sm:$0xff]  ;;  %119 = vmatprep.mubr.msk.f32.mxu0 %vm129_vm1, %v128_v0 }
   0x2   :  { %118 = vmatpush3.xpose.msra.mxu0 %v19_v1  ;;  %v20_v2 = vld [vmem:[%s158_s0] sm:$0xff] }
   0x5   :  { %120 = vmatmul.mubr.f32.vlgmr.msra.gmra.mrb[0].mxu0 %v20_v2 }
   0x8   :  { %v94_v9 = vld [vmem:[#allocation2] sm:$0xff] }
  0xd8   :  { %v87_v3 = vpop.f32.mrb[0].mxu0 }
  0xd9   :  { %v114_v4 = vadd.f32 -1.0, %v87_v3  ;;  %v121_v5 = vpop.f32.mrb[1].mxu0 }
  0xdb   :  { %v92_v6 = vmul.f32 1.442695, %v114_v4 }
  0xdd   :  { %124 = vpow2.f32 %v92_v6 }
  0xe7   :  { %v125_v7 = vpop.eup %124 }
  0xe8   :  { %v96_v8 = vsel %vm95_vm2, %v125_v7, 0.0 }
  0xe9   :  { %97 = vadd.xlane.f32.xlu0 %v96_v8 }
 0x176   :  { %v98_v10 = vpop.xlane.xlu0 %97 }
 0x177   :  { %v99_v11 = vadd.f32 %v98_v10, %v94_v9 }
 0x179   :  { %101 = vst.msk [vmem:[#allocation2] sm:$0xff] %vm15_vm0, %v99_v11 }
 0x180   :  { %v105_v12 = vld [vmem:[#allocation2] sm:$0xff] }
 0x181   :  { %126 = vlog2.f32 %v105_v12 }
 0x18b   :  { %v127_v13 = vpop.eup %126 }
 0x18c   :  { %v107_v14 = vmul.f32 0.6931472, %v127_v13 }
 0x18e   :  { %v108_v15 = vadd.f32 1.0, %v107_v14 }
 0x190   :  { %109 = vst.msk [vmem:[%s159_s2] sm:$0xff] %vm15_vm0, %v108_v15 }

</bundles_post_ra>
